<compile_context>
chip_gen: v6e
topology: v6e:2x2x1
jax: 0.10.0
libtpu: 0.0.40
codegen_flags: <defaults>
</compile_context>

<pallas_src>
import functools

import jax
import jax.numpy as jnp
from jax.experimental import pallas as pl
from jax.experimental.pallas import tpu as pltpu

_LANE = 128
_SUBLANE = 8
_MAX_BATCH_TILE = 256


def _round_up(n, m):
    return ((n + m - 1) // m) * m


def _fused_mlp_kernel(*refs, num_hidden):
    # refs = (x, w1, b1, [w2, b2, [w3, b3, [w4, b4]]], w_out, b_out, o)
    x_ref = refs[0]
    o_ref = refs[-1]
    wb_refs = refs[1:-1]

    # dropout -> identity (eval mode).
    h = x_ref[...]
    for i in range(num_hidden):
        w_ref, b_ref = wb_refs[2 * i], wb_refs[2 * i + 1]
        h = jnp.dot(h, w_ref[...], preferred_element_type=jnp.float32)
        h = jnp.maximum(h + b_ref[...], 0.0)

    w_ref, b_ref = wb_refs[2 * num_hidden], wb_refs[2 * num_hidden + 1]
    y = jnp.dot(h, w_ref[...], preferred_element_type=jnp.float32) + b_ref[...]
    o_ref[...] = y.astype(o_ref.dtype)


def _pad2(a, rows, cols):
    r, c = a.shape
    return jnp.pad(a, ((0, rows - r), (0, cols - c)))


@functools.partial(jax.jit, static_argnames=("hidden_layers_count",))
def model_forward(params, x, hidden_layers_count):
    """x: [B, 784] f32 -> logits [B, 10] f32 (eval-mode dropout = identity)."""
    B, IN = x.shape
    OUT = 10
    H = params["h1"][0].shape[1]

    INp = _round_up(IN, _LANE)      # 784 -> 896
    Hp = _round_up(H, _LANE)        # hidden -> 128-aligned
    OUTp = _round_up(OUT, _LANE)    # 10  -> 128
    Bp = _round_up(max(B, _SUBLANE), _SUBLANE)

    # Batch tiling: grid over batch only when it exceeds one tile (parallel ->
    # shards across v7x's 2 TensorCores; single-block otherwise).
    if Bp <= _MAX_BATCH_TILE:
        bt = Bp
    else:
        bt = _MAX_BATCH_TILE
        Bp = _round_up(Bp, bt)
    grid = (Bp // bt,)

    layer_names = (["h1"]
                   + [f"h{i}" for i in range(2, hidden_layers_count + 1)]
                   + ["out"])
    in_dims = [INp] + [Hp] * (hidden_layers_count - 1) + [Hp]
    out_dims = [Hp] * hidden_layers_count + [OUTp]

    x_p = _pad2(x.astype(jnp.float32), Bp, INp)
    operands = [x_p]
    in_specs = [pl.BlockSpec((bt, INp), lambda i: (i, 0))]
    for name, din, dout in zip(layer_names, in_dims, out_dims):
        w, b = params[name]
        operands.append(_pad2(w.astype(jnp.float32), din, dout))
        operands.append(_pad2(b.reshape(1, -1).astype(jnp.float32), 1, dout))
        in_specs.append(pl.BlockSpec((din, dout), lambda i: (0, 0)))
        in_specs.append(pl.BlockSpec((1, dout), lambda i: (0, 0)))

    kernel = functools.partial(_fused_mlp_kernel, num_hidden=hidden_layers_count)
    out_p = pl.pallas_call(
        kernel,
        out_shape=jax.ShapeDtypeStruct((Bp, OUTp), jnp.float32),
        grid=grid,
        in_specs=in_specs,
        out_specs=pl.BlockSpec((bt, OUTp), lambda i: (i, 0)),
        compiler_params=pltpu.CompilerParams(
            dimension_semantics=("parallel",),
            vmem_limit_bytes=8 << 20,   # tiny working set; leave headroom on v7x
        ),
    )(*operands)

    return out_p[:B, :OUT]


def init_linear_params(key, in_features, out_features, dtype=jnp.float32):
    # Mimics nn.Linear init: U(-1/sqrt(in), 1/sqrt(in)); W stored as [in, out].
    kw, kb = jax.random.split(key)
    bound = 1.0 / (in_features ** 0.5)
    w = jax.random.uniform(kw, (in_features, out_features), dtype, -bound, bound)
    b = jax.random.uniform(kb, (out_features,), dtype, -bound, bound)
    return w, b


def make_model_params(key, hidden_layers_count, hidden_layer_size):
    keys = jax.random.split(key, 5)
    params = {"h1": init_linear_params(keys[0], 784, hidden_layer_size)}
    if hidden_layers_count > 1:
        params["h2"] = init_linear_params(keys[1], hidden_layer_size, hidden_layer_size)
    if hidden_layers_count > 2:
        params["h3"] = init_linear_params(keys[2], hidden_layer_size, hidden_layer_size)
    if hidden_layers_count > 3:
        params["h4"] = init_linear_params(keys[3], hidden_layer_size, hidden_layer_size)
    params["out"] = init_linear_params(keys[4], hidden_layer_size, 10)
    return params


if __name__ == "__main__":
    hidden_layers_count = 3
    hidden_layer_size = 32
    batch = 8

    key = jax.random.PRNGKey(0)
    k_params, k_x = jax.random.split(key)

    params = make_model_params(k_params, hidden_layers_count, hidden_layer_size)
    x = jax.random.normal(k_x, (batch, 784), dtype=jnp.float32)

    out = model_forward(params, x, hidden_layers_count=hidden_layers_count)
    out = jax.block_until_ready(out)

    # Plain-JAX reference of the same (eval-mode) forward pass.
    ref = x
    ref = jnp.maximum(ref @ params["h1"][0] + params["h1"][1], 0.0)
    if hidden_layers_count > 1:
        ref = jnp.maximum(ref @ params["h2"][0] + params["h2"][1], 0.0)
    if hidden_layers_count > 2:
        ref = jnp.maximum(ref @ params["h3"][0] + params["h3"][1], 0.0)
    if hidden_layers_count > 3:
        ref = jnp.maximum(ref @ params["h4"][0] + params["h4"][1], 0.0)
    ref = ref @ params["out"][0] + params["out"][1]

    assert out.shape == (batch, 10), out.shape
    assert jnp.allclose(out, ref, atol=1e-4, rtol=1e-4), float(jnp.max(jnp.abs(out - ref)))
    print("KERNEL_OK")
</pallas_src>

<mosaic_0001>
module attributes {stable_mosaic.version = 11 : i64} {
  func.func @_fused_mlp_kernel(%arg0: i32, %arg1: memref<8x896xf32, #tpu.memory_space<vmem>>, %arg2: memref<896x128xf32, #tpu.memory_space<vmem>>, %arg3: memref<1x128xf32, #tpu.memory_space<vmem>>, %arg4: memref<128x128xf32, #tpu.memory_space<vmem>>, %arg5: memref<1x128xf32, #tpu.memory_space<vmem>>, %arg6: memref<128x128xf32, #tpu.memory_space<vmem>>, %arg7: memref<1x128xf32, #tpu.memory_space<vmem>>, %arg8: memref<128x128xf32, #tpu.memory_space<vmem>>, %arg9: memref<1x128xf32, #tpu.memory_space<vmem>>, %arg10: memref<8x128xf32, #tpu.memory_space<vmem>>) attributes {dimension_semantics = [#tpu.dimension_semantics<parallel>], iteration_bounds = array<i64: 1>, scalar_prefetch = 0 : i64, scratch_operands = 0 : i64, tpu.core_type = #tpu.core_type<tc>, window_params = [{transform_indices = @transform_0, window_bounds = array<i64: 8, 896>}, {pipeline_mode = #tpu.pipeline_mode<synchronous>, transform_indices = @transform_1, window_bounds = array<i64: 896, 128>}, {pipeline_mode = #tpu.pipeline_mode<synchronous>, transform_indices = @transform_2, window_bounds = array<i64: 1, 128>}, {pipeline_mode = #tpu.pipeline_mode<synchronous>, transform_indices = @transform_3, window_bounds = array<i64: 128, 128>}, {pipeline_mode = #tpu.pipeline_mode<synchronous>, transform_indices = @transform_4, window_bounds = array<i64: 1, 128>}, {pipeline_mode = #tpu.pipeline_mode<synchronous>, transform_indices = @transform_5, window_bounds = array<i64: 128, 128>}, {pipeline_mode = #tpu.pipeline_mode<synchronous>, transform_indices = @transform_6, window_bounds = array<i64: 1, 128>}, {pipeline_mode = #tpu.pipeline_mode<synchronous>, transform_indices = @transform_7, window_bounds = array<i64: 128, 128>}, {pipeline_mode = #tpu.pipeline_mode<synchronous>, transform_indices = @transform_8, window_bounds = array<i64: 1, 128>}, {transform_indices = @transform_9, window_bounds = array<i64: 8, 128>}]} {
    %c0 = arith.constant 0 : index
    %c0_0 = arith.constant 0 : index
    %0 = vector.load %arg1[%c0, %c0_0] : memref<8x896xf32, #tpu.memory_space<vmem>>, vector<8x896xf32>
    %c0_1 = arith.constant 0 : index
    %c0_2 = arith.constant 0 : index
    %1 = vector.load %arg2[%c0_1, %c0_2] : memref<896x128xf32, #tpu.memory_space<vmem>>, vector<896x128xf32>
    %cst = arith.constant dense<0.000000e+00> : vector<8x128xf32>
    %2 = tpu.matmul %0, %1, %cst {dimension_numbers = #tpu.dot_dimension_numbers<[1], [0], [0], [1], [0, 0, 1, 1], [], []>} : vector<8x896xf32>, vector<896x128xf32>, vector<8x128xf32> -> vector<8x128xf32>
    %c0_3 = arith.constant 0 : index
    %c0_4 = arith.constant 0 : index
    %3 = vector.load %arg3[%c0_3, %c0_4] : memref<1x128xf32, #tpu.memory_space<vmem>>, vector<1x128xf32>
    %4 = vector.broadcast %3 : vector<1x128xf32> to vector<8x128xf32>
    %5 = arith.addf %2, %4 : vector<8x128xf32>
    %cst_5 = arith.constant 0.000000e+00 : f32
    %6 = vector.broadcast %cst_5 : f32 to vector<8x128xf32>
    %7 = arith.maximumf %5, %6 : vector<8x128xf32>
    %c0_6 = arith.constant 0 : index
    %c0_7 = arith.constant 0 : index
    %8 = vector.load %arg4[%c0_6, %c0_7] : memref<128x128xf32, #tpu.memory_space<vmem>>, vector<128x128xf32>
    %cst_8 = arith.constant dense<0.000000e+00> : vector<8x128xf32>
    %9 = tpu.matmul %7, %8, %cst_8 {dimension_numbers = #tpu.dot_dimension_numbers<[1], [0], [0], [1], [0, 0, 1, 1], [], []>} : vector<8x128xf32>, vector<128x128xf32>, vector<8x128xf32> -> vector<8x128xf32>
    %c0_9 = arith.constant 0 : index
    %c0_10 = arith.constant 0 : index
    %10 = vector.load %arg5[%c0_9, %c0_10] : memref<1x128xf32, #tpu.memory_space<vmem>>, vector<1x128xf32>
    %11 = vector.broadcast %10 : vector<1x128xf32> to vector<8x128xf32>
    %12 = arith.addf %9, %11 : vector<8x128xf32>
    %cst_11 = arith.constant 0.000000e+00 : f32
    %13 = vector.broadcast %cst_11 : f32 to vector<8x128xf32>
    %14 = arith.maximumf %12, %13 : vector<8x128xf32>
    %c0_12 = arith.constant 0 : index
    %c0_13 = arith.constant 0 : index
    %15 = vector.load %arg6[%c0_12, %c0_13] : memref<128x128xf32, #tpu.memory_space<vmem>>, vector<128x128xf32>
    %cst_14 = arith.constant dense<0.000000e+00> : vector<8x128xf32>
    %16 = tpu.matmul %14, %15, %cst_14 {dimension_numbers = #tpu.dot_dimension_numbers<[1], [0], [0], [1], [0, 0, 1, 1], [], []>} : vector<8x128xf32>, vector<128x128xf32>, vector<8x128xf32> -> vector<8x128xf32>
    %c0_15 = arith.constant 0 : index
    %c0_16 = arith.constant 0 : index
    %17 = vector.load %arg7[%c0_15, %c0_16] : memref<1x128xf32, #tpu.memory_space<vmem>>, vector<1x128xf32>
    %18 = vector.broadcast %17 : vector<1x128xf32> to vector<8x128xf32>
    %19 = arith.addf %16, %18 : vector<8x128xf32>
    %cst_17 = arith.constant 0.000000e+00 : f32
    %20 = vector.broadcast %cst_17 : f32 to vector<8x128xf32>
    %21 = arith.maximumf %19, %20 : vector<8x128xf32>
    %c0_18 = arith.constant 0 : index
    %c0_19 = arith.constant 0 : index
    %22 = vector.load %arg8[%c0_18, %c0_19] : memref<128x128xf32, #tpu.memory_space<vmem>>, vector<128x128xf32>
    %cst_20 = arith.constant dense<0.000000e+00> : vector<8x128xf32>
    %23 = tpu.matmul %21, %22, %cst_20 {dimension_numbers = #tpu.dot_dimension_numbers<[1], [0], [0], [1], [0, 0, 1, 1], [], []>} : vector<8x128xf32>, vector<128x128xf32>, vector<8x128xf32> -> vector<8x128xf32>
    %c0_21 = arith.constant 0 : index
    %c0_22 = arith.constant 0 : index
    %24 = vector.load %arg9[%c0_21, %c0_22] : memref<1x128xf32, #tpu.memory_space<vmem>>, vector<1x128xf32>
    %25 = vector.broadcast %24 : vector<1x128xf32> to vector<8x128xf32>
    %26 = arith.addf %23, %25 : vector<8x128xf32>
    %c0_23 = arith.constant 0 : index
    %c0_24 = arith.constant 0 : index
    %27 = vector.load %arg10[%c0_23, %c0_24] : memref<8x128xf32, #tpu.memory_space<vmem>>, vector<8x128xf32>
    tpu.vector_store %arg10[%c0_23, %c0_24], %26 {strides = array<i32>} : memref<8x128xf32, #tpu.memory_space<vmem>>, vector<8x128xf32>,
    return
  }
  func.func @transform_0(%arg0: i32) -> (i32, i32) {
    %c0_i32 = arith.constant 0 : i32
    %c0_i32_0 = arith.constant 0 : i32
    return %arg0, %c0_i32 : i32, i32
  }
  func.func @transform_1(%arg0: i32) -> (i32, i32) {
    %c0_i32 = arith.constant 0 : i32
    %c0_i32_0 = arith.constant 0 : i32
    %c0_i32_1 = arith.constant 0 : i32
    return %c0_i32, %c0_i32_0 : i32, i32
  }
  func.func @transform_2(%arg0: i32) -> (i32, i32) {
    %c0_i32 = arith.constant 0 : i32
    %c0_i32_0 = arith.constant 0 : i32
    %c0_i32_1 = arith.constant 0 : i32
    return %c0_i32, %c0_i32_0 : i32, i32
  }
  func.func @transform_3(%arg0: i32) -> (i32, i32) {
    %c0_i32 = arith.constant 0 : i32
    %c0_i32_0 = arith.constant 0 : i32
    %c0_i32_1 = arith.constant 0 : i32
    return %c0_i32, %c0_i32_0 : i32, i32
  }
  func.func @transform_4(%arg0: i32) -> (i32, i32) {
    %c0_i32 = arith.constant 0 : i32
    %c0_i32_0 = arith.constant 0 : i32
    %c0_i32_1 = arith.constant 0 : i32
    return %c0_i32, %c0_i32_0 : i32, i32
  }
  func.func @transform_5(%arg0: i32) -> (i32, i32) {
    %c0_i32 = arith.constant 0 : i32
    %c0_i32_0 = arith.constant 0 : i32
    %c0_i32_1 = arith.constant 0 : i32
    return %c0_i32, %c0_i32_0 : i32, i32
  }
  func.func @transform_6(%arg0: i32) -> (i32, i32) {
    %c0_i32 = arith.constant 0 : i32
    %c0_i32_0 = arith.constant 0 : i32
    %c0_i32_1 = arith.constant 0 : i32
    return %c0_i32, %c0_i32_0 : i32, i32
  }
  func.func @transform_7(%arg0: i32) -> (i32, i32) {
    %c0_i32 = arith.constant 0 : i32
    %c0_i32_0 = arith.constant 0 : i32
    %c0_i32_1 = arith.constant 0 : i32
    return %c0_i32, %c0_i32_0 : i32, i32
  }
  func.func @transform_8(%arg0: i32) -> (i32, i32) {
    %c0_i32 = arith.constant 0 : i32
    %c0_i32_0 = arith.constant 0 : i32
    %c0_i32_1 = arith.constant 0 : i32
    return %c0_i32, %c0_i32_0 : i32, i32
  }
  func.func @transform_9(%arg0: i32) -> (i32, i32) {
    %c0_i32 = arith.constant 0 : i32
    %c0_i32_0 = arith.constant 0 : i32
    return %arg0, %c0_i32 : i32, i32
  }
}

</mosaic_0001>

<bundles_post_ra>
// kernel: model_forward.1
= control target key start
LH: loop header
LB: loop body
LE: loop exit
PB: predicated region body
PF: predicated region fallthrough
CT: control target
= control target key end

     0   :  { %s1719_s0 = inlined_call_operand.vmem [shape: f32[8,896], index: 0, kind: input, shape index: {}]   ;;  %s1720_s1 = inlined_call_operand.vmem [shape: f32[896,128], index: 1, kind: input, shape index: {}]   ;;  %s1721_s2 = inlined_call_operand.vmem [shape: f32[1,128], index: 2, kind: input, shape index: {}]   ;;  %s1722_s3 = inlined_call_operand.vmem [shape: f32[128,128], index: 3, kind: input, shape index: {}]   ;;  %s1723_s4 = inlined_call_operand.vmem [shape: f32[1,128], index: 4, kind: input, shape index: {}]   ;;  %s1724_s5 = inlined_call_operand.vmem [shape: f32[128,128], index: 5, kind: input, shape index: {}]   ;;  %s1725_s6 = inlined_call_operand.vmem [shape: f32[1,128], index: 6, kind: input, shape index: {}]   ;;  %s1726_s7 = inlined_call_operand.vmem [shape: f32[128,128], index: 7, kind: input, shape index: {}]   ;;  %s1727_s8 = inlined_call_operand.vmem [shape: f32[1,128], index: 8, kind: input, shape index: {}]   ;;  %s1728_s9 = inlined_call_operand.hbm [shape: f32[8,128], index: 9, kind: output, shape index: {}]  }
   0x1   :  { %v71_v0 = vld [vmem:[%s1720_s1 + $0xf8] sm:$0xff]  ;;  %v70_v2 = vld [vmem:[%s1720_s1 + $0xf0] sm:$0xff]  ;;  %v69_v6 = vld [vmem:[%s1720_s1 + $0xe8] sm:$0xff] }
   0x2   :  { %v55_v1 = vld [vmem:[%s1720_s1 + $0x78] sm:$0xff]  ;;  %740 = vmatprep.subr.mxu0 %v71_v0  ;;  %v54_v4 = vld [vmem:[%s1720_s1 + $0x70] sm:$0xff]  ;;  %v53_v8 = vld [vmem:[%s1720_s1 + $0x68] sm:$0xff] }
   0x3   :  { %v103_v3 = vld [vmem:[%s1720_s1 + $0x1f8] sm:$0xff]  ;;  %741 = vmatpush3.msra.mxu0 %v55_v1  ;;  %v102_v7 = vld [vmem:[%s1720_s1 + $0x1f0] sm:$0xff]  ;;  %v101_v10 = vld [vmem:[%s1720_s1 + $0x1e8] sm:$0xff] }
   0x4   :  { %v87_v5 = vld [vmem:[%s1720_s1 + $0x178] sm:$0xff]  ;;  %775 = vmatprep.subr.mxu1 %v103_v3  ;;  %742 = vmatprep.subr.mxu0 %v70_v2  ;;  %v86_v9 = vld [vmem:[%s1720_s1 + $0x170] sm:$0xff]  ;;  %v68_v11 = vld [vmem:[%s1720_s1 + $0xe0] sm:$0xff] }
   0x5   :  { %776 = vmatpush3.msra.mxu1 %v87_v5  ;;  %743 = vmatpush3.msra.mxu0 %v54_v4  ;;  %v85_v12 = vld [vmem:[%s1720_s1 + $0x168] sm:$0xff]  ;;  %v52_v13 = vld [vmem:[%s1720_s1 + $0x60] sm:$0xff]  ;;  %v67_v15 = vld [vmem:[%s1720_s1 + $0xd8] sm:$0xff] }
   0x6   :  { %777 = vmatprep.subr.mxu1 %v102_v7  ;;  %744 = vmatprep.subr.mxu0 %v69_v6  ;;  %v100_v14 = vld [vmem:[%s1720_s1 + $0x1e0] sm:$0xff]  ;;  %v51_v17 = vld [vmem:[%s1720_s1 + $0x58] sm:$0xff]  ;;  %v66_v19 = vld [vmem:[%s1720_s1 + $0xd0] sm:$0xff] }
   0x7   :  { %778 = vmatpush3.msra.mxu1 %v86_v9  ;;  %745 = vmatpush3.msra.mxu0 %v53_v8  ;;  %v84_v16 = vld [vmem:[%s1720_s1 + $0x160] sm:$0xff]  ;;  %v99_v18 = vld [vmem:[%s1720_s1 + $0x1d8] sm:$0xff]  ;;  %v50_v21 = vld [vmem:[%s1720_s1 + $0x50] sm:$0xff] }
   0x8   :  { %779 = vmatprep.subr.mxu1 %v101_v10  ;;  %746 = vmatprep.subr.mxu0 %v68_v11  ;;  %v83_v20 = vld [vmem:[%s1720_s1 + $0x158] sm:$0xff]  ;;  %v98_v22 = vld [vmem:[%s1720_s1 + $0x1d0] sm:$0xff]  ;;  %v65_v23 = vld [vmem:[%s1720_s1 + $0xc8] sm:$0xff]  ;;  %v1078_v11 = vmov 0.0  }
   0x9   :  { %780 = vmatpush3.msra.mxu1 %v85_v12  ;;  %747 = vmatpush3.msra.mxu0 %v52_v13  ;;  %v82_v24 = vld [vmem:[%s1720_s1 + $0x150] sm:$0xff]  ;;  %v49_v25 = vld [vmem:[%s1720_s1 + $0x48] sm:$0xff]  ;;  %v64_v27 = vld [vmem:[%s1720_s1 + $0xc0] sm:$0xff] }
   0xa   :  { %781 = vmatprep.subr.mxu1 %v100_v14  ;;  %748 = vmatprep.subr.mxu0 %v67_v15  ;;  %v97_v26 = vld [vmem:[%s1720_s1 + $0x1c8] sm:$0xff]  ;;  %v48_v29 = vld [vmem:[%s1720_s1 + $0x40] sm:$0xff]  ;;  %v63_v31 = vld [vmem:[%s1720_s1 + $0xb8] sm:$0xff] }
   0xb   :  { %782 = vmatpush3.msra.mxu1 %v84_v16  ;;  %749 = vmatpush3.msra.mxu0 %v51_v17  ;;  %v81_v28 = vld [vmem:[%s1720_s1 + $0x148] sm:$0xff]  ;;  %v96_v30 = vld [vmem:[%s1720_s1 + $0x1c0] sm:$0xff]  ;;  %v47_v33 = vld [vmem:[%s1720_s1 + $0x38] sm:$0xff] }
   0xc   :  { %783 = vmatprep.subr.mxu1 %v99_v18  ;;  %750 = vmatprep.subr.mxu0 %v66_v19  ;;  %v80_v32 = vld [vmem:[%s1720_s1 + $0x140] sm:$0xff]  ;;  %v95_v34 = vld [vmem:[%s1720_s1 + $0x1b8] sm:$0xff]  ;;  %v62_v35 = vld [vmem:[%s1720_s1 + $0xb0] sm:$0xff] }
   0xd   :  { %784 = vmatpush3.msra.mxu1 %v83_v20  ;;  %751 = vmatpush3.msra.mxu0 %v50_v21  ;;  %v79_v36 = vld [vmem:[%s1720_s1 + $0x138] sm:$0xff]  ;;  %v46_v37 = vld [vmem:[%s1720_s1 + $0x30] sm:$0xff]  ;;  %v61_v39 = vld [vmem:[%s1720_s1 + $0xa8] sm:$0xff] }
   0xe   :  { %785 = vmatprep.subr.mxu1 %v98_v22  ;;  %752 = vmatprep.subr.mxu0 %v65_v23  ;;  %v94_v38 = vld [vmem:[%s1720_s1 + $0x1b0] sm:$0xff]  ;;  %v45_v41 = vld [vmem:[%s1720_s1 + $0x28] sm:$0xff]  ;;  %v60_v43 = vld [vmem:[%s1720_s1 + $0xa0] sm:$0xff] }
   0xf   :  { %786 = vmatpush3.msra.mxu1 %v82_v24  ;;  %753 = vmatpush3.msra.mxu0 %v49_v25  ;;  %v78_v40 = vld [vmem:[%s1720_s1 + $0x130] sm:$0xff]  ;;  %v93_v42 = vld [vmem:[%s1720_s1 + $0x1a8] sm:$0xff]  ;;  %v44_v45 = vld [vmem:[%s1720_s1 + $0x20] sm:$0xff] }
  0x10   :  { %787 = vmatprep.subr.mxu1 %v97_v26  ;;  %754 = vmatprep.subr.mxu0 %v64_v27  ;;  %v77_v44 = vld [vmem:[%s1720_s1 + $0x128] sm:$0xff]  ;;  %v92_v46 = vld [vmem:[%s1720_s1 + $0x1a0] sm:$0xff]  ;;  %v59_v47 = vld [vmem:[%s1720_s1 + $0x98] sm:$0xff] }
  0x11   :  { %788 = vmatpush3.msra.mxu1 %v81_v28  ;;  %755 = vmatpush3.msra.mxu0 %v48_v29  ;;  %v76_v48 = vld [vmem:[%s1720_s1 + $0x120] sm:$0xff]  ;;  %v43_v49 = vld [vmem:[%s1720_s1 + $0x18] sm:$0xff]  ;;  %v58_v51 = vld [vmem:[%s1720_s1 + $0x90] sm:$0xff] }
  0x12   :  { %789 = vmatprep.subr.mxu1 %v96_v30  ;;  %756 = vmatprep.subr.mxu0 %v63_v31  ;;  %v91_v50 = vld [vmem:[%s1720_s1 + $0x198] sm:$0xff]  ;;  %v42_v53 = vld [vmem:[%s1720_s1 + $0x10] sm:$0xff]  ;;  %v57_v55 = vld [vmem:[%s1720_s1 + $0x88] sm:$0xff] }
  0x13   :  { %790 = vmatpush3.msra.mxu1 %v80_v32  ;;  %757 = vmatpush3.msra.mxu0 %v47_v33  ;;  %v75_v52 = vld [vmem:[%s1720_s1 + $0x118] sm:$0xff]  ;;  %v90_v54 = vld [vmem:[%s1720_s1 + $0x190] sm:$0xff]  ;;  %v41_v57 = vld [vmem:[%s1720_s1 + $0x8] sm:$0xff] }
  0x14   :  { %791 = vmatprep.subr.mxu1 %v95_v34  ;;  %758 = vmatprep.subr.mxu0 %v62_v35  ;;  %v74_v56 = vld [vmem:[%s1720_s1 + $0x110] sm:$0xff]  ;;  %v89_v58 = vld [vmem:[%s1720_s1 + $0x188] sm:$0xff]  ;;  %v56_v59 = vld [vmem:[%s1720_s1 + $0x80] sm:$0xff] }
  0x15   :  { %792 = vmatpush3.msra.mxu1 %v79_v36  ;;  %759 = vmatpush3.msra.mxu0 %v46_v37  ;;  %v34_v60 = vld [vmem:[%s1719_s0 + $0x8] sm:$0xff]  ;;  %v40_v61 = vld [vmem:[%s1720_s1] sm:$0xff]  ;;  %v135_v1 = vld [vmem:[%s1720_s1 + $0x2f8] sm:$0xff] }
  0x16   :  { %793 = vmatprep.subr.mxu1 %v94_v38  ;;  %760 = vmatprep.subr.mxu0 %v61_v39  ;;  %v73_v62 = vld [vmem:[%s1720_s1 + $0x108] sm:$0xff]  ;;  %v33_v63 = vld [vmem:[%s1719_s0] sm:$0xff]  ;;  %v36_v3 = vld [vmem:[%s1719_s0 + $0x18] sm:$0xff] }
  0x17   :  { %794 = vmatpush3.msra.mxu1 %v78_v40  ;;  %761 = vmatpush3.msra.mxu0 %v45_v41  ;;  %v88_v0 = vld [vmem:[%s1720_s1 + $0x180] sm:$0xff]  ;;  %v119_v4 = vld [vmem:[%s1720_s1 + $0x278] sm:$0xff]  ;;  %v35_v5 = vld [vmem:[%s1719_s0 + $0x10] sm:$0xff] }
  0x18   :  { %795 = vmatprep.subr.mxu1 %v93_v42  ;;  %762 = vmatprep.subr.mxu0 %v60_v43  ;;  %v72_v2 = vld [vmem:[%s1720_s1 + $0x100] sm:$0xff]  ;;  %v134_v6 = vld [vmem:[%s1720_s1 + $0x2f0] sm:$0xff]  ;;  %v133_v8 = vld [vmem:[%s1720_s1 + $0x2e8] sm:$0xff] }
  0x19   :  { %796 = vmatpush3.msra.mxu1 %v77_v44  ;;  %763 = vmatpush3.msra.mxu0 %v44_v45  ;;  %v118_v7 = vld [vmem:[%s1720_s1 + $0x270] sm:$0xff]  ;;  %v151_v9 = vld [vmem:[%s1720_s1 + $0x378] sm:$0xff]  ;;  %v117_v10 = vld [vmem:[%s1720_s1 + $0x268] sm:$0xff] }
  0x1a   :  { %797 = vmatprep.subr.mxu1 %v92_v46  ;;  %764 = vmatprep.subr.mxu0 %v59_v47  ;;  %v132_v12 = vld [vmem:[%s1720_s1 + $0x2e0] sm:$0xff]  ;;  %v150_v13 = vld [vmem:[%s1720_s1 + $0x370] sm:$0xff]  ;;  %v131_v15 = vld [vmem:[%s1720_s1 + $0x2d8] sm:$0xff] }
  0x1b   :  { %798 = vmatpush3.msra.mxu1 %v76_v48  ;;  %765 = vmatpush3.msra.mxu0 %v43_v49  ;;  %v116_v14 = vld [vmem:[%s1720_s1 + $0x260] sm:$0xff]  ;;  %v149_v16 = vld [vmem:[%s1720_s1 + $0x368] sm:$0xff] }
  0x1c   :  { %799 = vmatprep.subr.mxu1 %v91_v50  ;;  %766 = vmatprep.subr.mxu0 %v58_v51 }
  0x1d   :  { %800 = vmatpush3.msra.mxu1 %v75_v52  ;;  %767 = vmatpush3.msra.mxu0 %v42_v53 }
  0x1e   :  { %801 = vmatprep.subr.mxu1 %v90_v54  ;;  %768 = vmatprep.subr.mxu0 %v57_v55 }
  0x1f   :  { %802 = vmatpush3.msra.mxu1 %v74_v56  ;;  %769 = vmatpush3.msra.mxu0 %v41_v57 }
  0x20   :  { %803 = vmatprep.subr.mxu1 %v89_v58  ;;  %770 = vmatprep.subr.mxu0 %v56_v59 }
  0x21   :  { %223 = vmatprep.mubr.f32.mxu0 %v34_v60  ;;  %771 = vmatpush3.msra.mxu0 %v40_v61 }
  0x22   :  { %804 = vmatpush3.msra.mxu1 %v73_v62  ;;  %224 = vmatmul.mubr.f32.vlgmr.msra.gmra.mxu0 %v33_v63 }
  0x23   :  { %805 = vmatprep.subr.mxu1 %v88_v0  ;;  %810 = vmatprep.subr.mxu0 %v135_v1 }
  0x24   :  { %806 = vmatpush3.msra.mxu1 %v72_v2  ;;  %293 = vmatprep.mubr.f32.mxu1 %v36_v3 }
  0x25   :  { %811 = vmatpush3.msra.mxu0 %v119_v4  ;;  %294 = vmatmul.mubr.f32.vlgmr.msra.gmra.mxu1 %v35_v5 }
  0x26   :  { %812 = vmatprep.subr.mxu0 %v134_v6  ;;  %913 = vmatprep.subr.mxu1 %v1078_v11 }
  0x27   :  { %813 = vmatpush3.msra.mxu0 %v118_v7  ;;  %914 = vmatpush3.msra.mxu1 %v151_v9 }
  0x28   :  { %814 = vmatprep.subr.mxu0 %v133_v8  ;;  %915 = vmatprep.subr.mxu1 %v1078_v11 }
  0x29   :  { %815 = vmatpush3.msra.mxu0 %v117_v10 }
  0x2a   :  { %14 = vsyncpa [#allocation3], 0  ;;  %816 = vmatprep.subr.mxu0 %v132_v12  ;;  %916 = vmatpush3.msra.mxu1 %v150_v13  ;;  %v115_v17 = vld [vmem:[%s1720_s1 + $0x258] sm:$0xff]  ;;  %v130_v18 = vld [vmem:[%s1720_s1 + $0x2d0] sm:$0xff]  ;;  %vm1079_vm0 = vmmov 0   ;;  %s1080_s18 = smov [#allocation2]  }
  0x2b   :  { %817 = vmatpush3.msra.mxu0 %v116_v14  ;;  %917 = vmatprep.subr.mxu1 %v1078_v11  ;;  %v148_v19 = vld [vmem:[%s1720_s1 + $0x360] sm:$0xff]  ;;  %v114_v20 = vld [vmem:[%s1720_s1 + $0x250] sm:$0xff]  ;;  %v129_v21 = vld [vmem:[%s1720_s1 + $0x2c8] sm:$0xff]  ;;  %s728_s19 = sshll.u32 %s1080_s18, 4  ;;  %s729_s19 = int_to_ptr.vmem [resolvable:$true] %s728_s19 }
  0x2c   :  { %818 = vmatprep.subr.mxu0 %v131_v15  ;;  %918 = vmatpush3.msra.mxu1 %v149_v16  ;;  %v147_v22 = vld [vmem:[%s1720_s1 + $0x358] sm:$0xff]  ;;  %v113_v23 = vld [vmem:[%s1720_s1 + $0x248] sm:$0xff]  ;;  %v128_v24 = vld [vmem:[%s1720_s1 + $0x2c0] sm:$0xff]  ;;  %p1061_p1 = scmp.lt.s32.totalorder %s729_s19, %s729_s19 }
  0x2d   :  { %819 = vmatpush3.msra.mxu0 %v115_v17  ;;  %919 = vmatprep.subr.mxu1 %v1078_v11  ;;  %v146_v25 = vld [vmem:[%s1720_s1 + $0x350] sm:$0xff]  ;;  %v112_v26 = vld [vmem:[%s1720_s1 + $0x240] sm:$0xff]  ;;  %v127_v27 = vld [vmem:[%s1720_s1 + $0x2b8] sm:$0xff] }
  0x2e   :  { %820 = vmatprep.subr.mxu0 %v130_v18  ;;  %920 = vmatpush3.msra.mxu1 %v148_v19  ;;  %v145_v28 = vld [vmem:[%s1720_s1 + $0x348] sm:$0xff]  ;;  %v111_v29 = vld [vmem:[%s1720_s1 + $0x238] sm:$0xff]  ;;  %v126_v30 = vld [vmem:[%s1720_s1 + $0x2b0] sm:$0xff] }
  0x2f   :  { %821 = vmatpush3.msra.mxu0 %v114_v20  ;;  %921 = vmatprep.subr.mxu1 %v1078_v11  ;;  %v144_v31 = vld [vmem:[%s1720_s1 + $0x340] sm:$0xff]  ;;  %v110_v32 = vld [vmem:[%s1720_s1 + $0x230] sm:$0xff]  ;;  %v125_v33 = vld [vmem:[%s1720_s1 + $0x2a8] sm:$0xff] }
  0x30   :  { %822 = vmatprep.subr.mxu0 %v129_v21  ;;  %922 = vmatpush3.msra.mxu1 %v147_v22  ;;  %v143_v34 = vld [vmem:[%s1720_s1 + $0x338] sm:$0xff]  ;;  %v109_v35 = vld [vmem:[%s1720_s1 + $0x228] sm:$0xff]  ;;  %v124_v36 = vld [vmem:[%s1720_s1 + $0x2a0] sm:$0xff] }
  0x31   :  { %823 = vmatpush3.msra.mxu0 %v113_v23  ;;  %923 = vmatprep.subr.mxu1 %v1078_v11  ;;  %v142_v37 = vld [vmem:[%s1720_s1 + $0x330] sm:$0xff]  ;;  %v108_v38 = vld [vmem:[%s1720_s1 + $0x220] sm:$0xff]  ;;  %v123_v39 = vld [vmem:[%s1720_s1 + $0x298] sm:$0xff] }
  0x32   :  { %824 = vmatprep.subr.mxu0 %v128_v24  ;;  %924 = vmatpush3.msra.mxu1 %v146_v25  ;;  %v141_v40 = vld [vmem:[%s1720_s1 + $0x328] sm:$0xff]  ;;  %v107_v41 = vld [vmem:[%s1720_s1 + $0x218] sm:$0xff]  ;;  %v122_v42 = vld [vmem:[%s1720_s1 + $0x290] sm:$0xff] }
  0x33   :  { %825 = vmatpush3.msra.mxu0 %v112_v26  ;;  %925 = vmatprep.subr.mxu1 %v1078_v11  ;;  %v140_v43 = vld [vmem:[%s1720_s1 + $0x320] sm:$0xff]  ;;  %v106_v44 = vld [vmem:[%s1720_s1 + $0x210] sm:$0xff]  ;;  %v121_v45 = vld [vmem:[%s1720_s1 + $0x288] sm:$0xff] }
  0x34   :  { %826 = vmatprep.subr.mxu0 %v127_v27  ;;  %926 = vmatpush3.msra.mxu1 %v145_v28  ;;  %v139_v46 = vld [vmem:[%s1720_s1 + $0x318] sm:$0xff]  ;;  %v105_v47 = vld [vmem:[%s1720_s1 + $0x208] sm:$0xff]  ;;  %v120_v48 = vld [vmem:[%s1720_s1 + $0x280] sm:$0xff] }
  0x35   :  { %827 = vmatpush3.msra.mxu0 %v111_v29  ;;  %927 = vmatprep.subr.mxu1 %v1078_v11  ;;  %v38_v49 = vld [vmem:[%s1719_s0 + $0x28] sm:$0xff]  ;;  %v104_v50 = vld [vmem:[%s1720_s1 + $0x200] sm:$0xff]  ;;  %v138_v51 = vld [vmem:[%s1720_s1 + $0x310] sm:$0xff] }
  0x36   :  { %828 = vmatprep.subr.mxu0 %v126_v30  ;;  %928 = vmatpush3.msra.mxu1 %v144_v31  ;;  %v37_v52 = vld [vmem:[%s1719_s0 + $0x20] sm:$0xff]  ;;  %v137_v53 = vld [vmem:[%s1720_s1 + $0x308] sm:$0xff]  ;;  %v39_v55 = vld [vmem:[%s1719_s0 + $0x30] sm:$0xff] }
  0x37   :  { %829 = vmatpush3.msra.mxu0 %v110_v32  ;;  %929 = vmatprep.subr.mxu1 %v1078_v11  ;;  %v136_v54 = vld [vmem:[%s1720_s1 + $0x300] sm:$0xff]  ;;  %v455_v56 = vld [vmem:[%s1722_s3 + $0x78] sm:$0xff]  ;;  %v454_v57 = vld [vmem:[%s1722_s3 + $0x70] sm:$0xff] }
  0x38   :  { %830 = vmatprep.subr.mxu0 %v125_v33  ;;  %930 = vmatpush3.msra.mxu1 %v143_v34  ;;  %v453_v58 = vld [vmem:[%s1722_s3 + $0x68] sm:$0xff]  ;;  %v452_v59 = vld [vmem:[%s1722_s3 + $0x60] sm:$0xff]  ;;  %v451_v60 = vld [vmem:[%s1722_s3 + $0x58] sm:$0xff] }
  0x39   :  { %831 = vmatpush3.msra.mxu0 %v109_v35  ;;  %931 = vmatprep.subr.mxu1 %v1078_v11  ;;  %v450_v61 = vld [vmem:[%s1722_s3 + $0x50] sm:$0xff]  ;;  %v449_v62 = vld [vmem:[%s1722_s3 + $0x48] sm:$0xff]  ;;  %v448_v63 = vld [vmem:[%s1722_s3 + $0x40] sm:$0xff] }
  0x3a   :  { %832 = vmatprep.subr.mxu0 %v124_v36  ;;  %932 = vmatpush3.msra.mxu1 %v142_v37  ;;  %v447_v0 = vld [vmem:[%s1722_s3 + $0x38] sm:$0xff]  ;;  %v446_v1 = vld [vmem:[%s1722_s3 + $0x30] sm:$0xff]  ;;  %v445_v2 = vld [vmem:[%s1722_s3 + $0x28] sm:$0xff] }
  0x3b   :  { %833 = vmatpush3.msra.mxu0 %v108_v38  ;;  %933 = vmatprep.subr.mxu1 %v1078_v11  ;;  %v444_v3 = vld [vmem:[%s1722_s3 + $0x20] sm:$0xff]  ;;  %v443_v4 = vld [vmem:[%s1722_s3 + $0x18] sm:$0xff]  ;;  %v442_v5 = vld [vmem:[%s1722_s3 + $0x10] sm:$0xff] }
  0x3c   :  { %834 = vmatprep.subr.mxu0 %v123_v39  ;;  %934 = vmatpush3.msra.mxu1 %v141_v40  ;;  %v441_v6 = vld [vmem:[%s1722_s3 + $0x8] sm:$0xff]  ;;  %v440_v7 = vld [vmem:[%s1722_s3] sm:$0xff]  ;;  %v549_v8 = vld [vmem:[%s1724_s5 + $0x78] sm:$0xff] }
  0x3d   :  { %835 = vmatpush3.msra.mxu0 %v107_v41  ;;  %935 = vmatprep.subr.mxu1 %v1078_v11  ;;  %v548_v9 = vld [vmem:[%s1724_s5 + $0x70] sm:$0xff]  ;;  %v547_v10 = vld [vmem:[%s1724_s5 + $0x68] sm:$0xff]  ;;  %v546_v12 = vld [vmem:[%s1724_s5 + $0x60] sm:$0xff] }
  0x3e   :  { %836 = vmatprep.subr.mxu0 %v122_v42  ;;  %936 = vmatpush3.msra.mxu1 %v140_v43  ;;  %v545_v13 = vld [vmem:[%s1724_s5 + $0x58] sm:$0xff]  ;;  %v544_v14 = vld [vmem:[%s1724_s5 + $0x50] sm:$0xff]  ;;  %v543_v15 = vld [vmem:[%s1724_s5 + $0x48] sm:$0xff] }
  0x3f   :  { %837 = vmatpush3.msra.mxu0 %v106_v44  ;;  %937 = vmatprep.subr.mxu1 %v1078_v11  ;;  %v542_v16 = vld [vmem:[%s1724_s5 + $0x40] sm:$0xff]  ;;  %v541_v17 = vld [vmem:[%s1724_s5 + $0x38] sm:$0xff]  ;;  %v540_v18 = vld [vmem:[%s1724_s5 + $0x30] sm:$0xff] }
  0x40   :  { %838 = vmatprep.subr.mxu0 %v121_v45  ;;  %938 = vmatpush3.msra.mxu1 %v139_v46  ;;  %v539_v19 = vld [vmem:[%s1724_s5 + $0x28] sm:$0xff]  ;;  %v538_v20 = vld [vmem:[%s1724_s5 + $0x20] sm:$0xff]  ;;  %v537_v21 = vld [vmem:[%s1724_s5 + $0x18] sm:$0xff] }
  0x41   :  { %839 = vmatpush3.msra.mxu0 %v105_v47  ;;  %939 = vmatprep.subr.mxu1 %v1078_v11  ;;  %v736_v26 = vld [vmem:[%s1721_s2] ss:$0 sm:$0xff]  ;;  %v536_v39 = vld [vmem:[%s1724_s5 + $0x10] sm:$0xff]  ;;  %v535_v40 = vld [vmem:[%s1724_s5 + $0x8] sm:$0xff] }
  0x42   :  { %840 = vmatprep.subr.mxu0 %v120_v48  ;;  %363 = vmatprep.mubr.f32.mxu0 %v38_v49  ;;  %v534_v41 = vld [vmem:[%s1724_s5] sm:$0xff]  ;;  %v643_v42 = vld [vmem:[%s1726_s7 + $0x78] sm:$0xff]  ;;  %v642_v43 = vld [vmem:[%s1726_s7 + $0x70] sm:$0xff] }
  0x43   :  { %841 = vmatpush3.msra.mxu0 %v104_v50  ;;  %940 = vmatpush3.msra.mxu1 %v138_v51  ;;  %v641_v44 = vld [vmem:[%s1726_s7 + $0x68] sm:$0xff]  ;;  %v640_v45 = vld [vmem:[%s1726_s7 + $0x60] sm:$0xff]  ;;  %v639_v46 = vld [vmem:[%s1726_s7 + $0x58] sm:$0xff] }
  0x44   :  { %364 = vmatmul.mubr.f32.vlgmr.msra.gmra.mxu0 %v37_v52  ;;  %941 = vmatprep.subr.mxu1 %v1078_v11  ;;  %v638_v47 = vld [vmem:[%s1726_s7 + $0x50] sm:$0xff]  ;;  %v637_v48 = vld [vmem:[%s1726_s7 + $0x48] sm:$0xff]  ;;  %v636_v49 = vld [vmem:[%s1726_s7 + $0x40] sm:$0xff] }
  0x45   :  { %942 = vmatpush3.msra.mxu1 %v137_v53  ;;  %945 = vmatprep.mubr.msk.f32.mxu1 %vm1079_vm0, %v1078_v11  ;;  %v635_v50 = vld [vmem:[%s1726_s7 + $0x38] sm:$0xff]  ;;  %v634_v51 = vld [vmem:[%s1726_s7 + $0x30] sm:$0xff]  ;;  %v633_v52 = vld [vmem:[%s1726_s7 + $0x28] sm:$0xff] }
  0x46   :  { %943 = vmatprep.subr.mxu1 %v1078_v11  ;;  %948 = vmatprep.subr.mxu0 %v1078_v11  ;;  %v632_v53 = vld [vmem:[%s1726_s7 + $0x20] sm:$0xff] }
  0x47   :  { %944 = vmatpush3.msra.mxu1 %v136_v54  ;;  %980 = vmatprep.mubr.msk.f32.mxu0 %vm1079_vm0, %v1078_v11  ;;  %v631_v54 = vld [vmem:[%s1726_s7 + $0x18] sm:$0xff] }
  0x48   :  { %946 = vmatmul.mubr.f32.vlgmr.msra.gmra.mxu1 %v39_v55  ;;  %983 = vmatprep.subr.mxu1 %v1078_v11  ;;  %v737_v55 = vld [vmem:[%s1723_s4] ss:$0 sm:$0xff] }
  0x49   :  { %1015 = vmatprep.mubr.msk.f32.mxu1 %vm1079_vm0, %v1078_v11  ;;  %949 = vmatpush3.msra.mxu0 %v455_v56 }
  0x4a   :  { %950 = vmatprep.subr.mxu0 %v1078_v11  ;;  %984 = vmatpush3.msra.mxu1 %v549_v8 }
  0x4b   :  { %951 = vmatpush3.msra.mxu0 %v454_v57  ;;  %985 = vmatprep.subr.mxu1 %v1078_v11 }
  0x4c   :  { %952 = vmatprep.subr.mxu0 %v1078_v11  ;;  %986 = vmatpush3.msra.mxu1 %v548_v9 }
  0x4d   :  { %953 = vmatpush3.msra.mxu0 %v453_v58  ;;  %987 = vmatprep.subr.mxu1 %v1078_v11 }
  0x4e   :  { %954 = vmatprep.subr.mxu0 %v1078_v11  ;;  %988 = vmatpush3.msra.mxu1 %v547_v10 }
  0x4f   :  { %955 = vmatpush3.msra.mxu0 %v452_v59  ;;  %989 = vmatprep.subr.mxu1 %v1078_v11 }
  0x50   :  { %956 = vmatprep.subr.mxu0 %v1078_v11  ;;  %990 = vmatpush3.msra.mxu1 %v546_v12 }
  0x51   :  { %957 = vmatpush3.msra.mxu0 %v451_v60  ;;  %991 = vmatprep.subr.mxu1 %v1078_v11  ;;  %v630_v60 = vld [vmem:[%s1726_s7 + $0x10] sm:$0xff] }
  0x52   :  { %958 = vmatprep.subr.mxu0 %v1078_v11  ;;  %992 = vmatpush3.msra.mxu1 %v545_v13 }
  0x53   :  { %959 = vmatpush3.msra.mxu0 %v450_v61  ;;  %993 = vmatprep.subr.mxu1 %v1078_v11  ;;  %v629_v61 = vld [vmem:[%s1726_s7 + $0x8] sm:$0xff] }
  0x54   :  { %960 = vmatprep.subr.mxu0 %v1078_v11  ;;  %994 = vmatpush3.msra.mxu1 %v544_v14 }
  0x55   :  { %961 = vmatpush3.msra.mxu0 %v449_v62  ;;  %995 = vmatprep.subr.mxu1 %v1078_v11  ;;  %v628_v62 = vld [vmem:[%s1726_s7] sm:$0xff]  ;;  %s1056_s7 = scalar_lea.vmem %s729_s19, 128 }
  0x56   :  { %962 = vmatprep.subr.mxu0 %v1078_v11  ;;  %996 = vmatpush3.msra.mxu1 %v543_v15  ;;  %p1057_p0 = scmp.ne.s32.totalorder %s729_s19, %s1056_s7  ;;  %p1062_p2 = scmp.lt.s32.totalorder %s1056_s7, %s1056_s7 }
  0x57   :  { %963 = vmatpush3.msra.mxu0 %v448_v63  ;;  %997 = vmatprep.subr.mxu1 %v1078_v11  ;;  %v738_v63 = vld [vmem:[%s1725_s6] ss:$0 sm:$0xff] }
  0x58   :  { %964 = vmatprep.subr.mxu0 %v1078_v11  ;;  %998 = vmatpush3.msra.mxu1 %v542_v16  ;;  %p1063_p3 = por %p1062_p2, %p1061_p1 }
  0x59   :  { %965 = vmatpush3.msra.mxu0 %v447_v0  ;;  %999 = vmatprep.subr.mxu1 %v1078_v11 }
  0x5a   :  { %966 = vmatprep.subr.mxu0 %v1078_v11  ;;  %1000 = vmatpush3.msra.mxu1 %v541_v17  ;;  %p1064_p4 = pnand %p1063_p3, %p1057_p0 }
  0x5b   :  { %967 = vmatpush3.msra.mxu0 %v446_v1  ;;  %1001 = vmatprep.subr.mxu1 %v1078_v11 }
  0x5c   :  { %968 = vmatprep.subr.mxu0 %v1078_v11  ;;  %1002 = vmatpush3.msra.mxu1 %v540_v18 }
  0x5d   :  { %969 = vmatpush3.msra.mxu0 %v445_v2  ;;  %1003 = vmatprep.subr.mxu1 %v1078_v11 }
  0x5e   :  { %970 = vmatprep.subr.mxu0 %v1078_v11  ;;  %1004 = vmatpush3.msra.mxu1 %v539_v19 }
  0x5f   :  { %971 = vmatpush3.msra.mxu0 %v444_v3  ;;  %1005 = vmatprep.subr.mxu1 %v1078_v11 }
  0x60   :  { %972 = vmatprep.subr.mxu0 %v1078_v11  ;;  %1006 = vmatpush3.msra.mxu1 %v538_v20 }
  0x61   :  { %973 = vmatpush3.msra.mxu0 %v443_v4  ;;  %1007 = vmatprep.subr.mxu1 %v1078_v11  ;;  %v739_v4 = vld [vmem:[%s1727_s8] ss:$0 sm:$0xff] }
  0x62   :  { %974 = vmatprep.subr.mxu0 %v1078_v11  ;;  %1008 = vmatpush3.msra.mxu1 %v537_v21 }
  0x63   :  { %975 = vmatpush3.msra.mxu0 %v442_v5  ;;  %1009 = vmatprep.subr.mxu1 %v1078_v11 }
  0x64   :  { %976 = vmatprep.subr.mxu0 %v1078_v11  ;;  %1010 = vmatpush3.msra.mxu1 %v536_v39 }
  0x65   :  { %977 = vmatpush3.msra.mxu0 %v441_v6  ;;  %1011 = vmatprep.subr.mxu1 %v1078_v11 }
  0x66   :  { %978 = vmatprep.subr.mxu0 %v1078_v11  ;;  %1012 = vmatpush3.msra.mxu1 %v535_v40 }
  0x67   :  { %979 = vmatpush3.msra.mxu0 %v440_v7  ;;  %1013 = vmatprep.subr.mxu1 %v1078_v11 }
  0x68   :  { %1018 = vmatprep.subr.mxu0 %v1078_v11  ;;  %1014 = vmatpush3.msra.mxu1 %v534_v41 }
  0xe2   :  { %v772_v22 = vpop.f32.mrf.mxu0 }
  0xe4   :  { %v773_v23 = vpop.f32.mrf.mxu0 }
  0xe5   :  { %v807_v24 = vpop.f32.mrf.mxu1  ;;  %v774_v25 = vadd.f32 %v773_v23, %v772_v22 }
  0xe7   :  { %v808_v27 = vpop.f32.mrf.mxu1  ;;  %v226_v28 = vadd.f32 %v774_v25, %v736_v26 }
  0xe8   :  { %v809_v29 = vadd.f32 %v808_v27, %v807_v24 }
  0xea   :  { %v296_v32 = vadd.f32 %v809_v29, %v226_v28 }
 0x104   :  { %v842_v30 = vpop.f32.mrf.mxu0 }
 0x106   :  { %v843_v31 = vpop.f32.mrf.mxu0 }
 0x107   :  { %v844_v33 = vadd.f32 %v843_v31, %v842_v30 }
 0x108   :  { %v435_v34 = vpop.f32.mrf.mxu1 }
 0x109   :  { %v366_v35 = vadd.f32 %v844_v33, %v296_v32 }
 0x10a   :  { %v947_v36 = vpop.f32.mrf.mxu1 }
 0x10b   :  { %v436_v37 = vadd.f32 %v435_v34, %v366_v35 }
 0x10d   :  { %v439_v38 = vmax.f32 %v436_v37, 0.0 }
 0x10f   :  { %981 = vmatmul.mubr.f32.vlgmr.msra.gmra.mxu0 %v439_v38 }
 0x110   :  { %1050 = vmatprep.mubr.msk.f32.mxu0 %vm1079_vm0, %v1078_v11  ;;  %1019 = vmatpush3.msra.mxu0 %v643_v42 }
 0x111   :  { %1020 = vmatprep.subr.mxu0 %v1078_v11 }
 0x112   :  { %1021 = vmatpush3.msra.mxu0 %v642_v43 }
 0x113   :  { %1022 = vmatprep.subr.mxu0 %v1078_v11 }
 0x114   :  { %1023 = vmatpush3.msra.mxu0 %v641_v44 }
 0x115   :  { %1024 = vmatprep.subr.mxu0 %v1078_v11 }
 0x116   :  { %1025 = vmatpush3.msra.mxu0 %v640_v45 }
 0x117   :  { %1026 = vmatprep.subr.mxu0 %v1078_v11 }
 0x118   :  { %1027 = vmatpush3.msra.mxu0 %v639_v46 }
 0x119   :  { %1028 = vmatprep.subr.mxu0 %v1078_v11 }
 0x11a   :  { %1029 = vmatpush3.msra.mxu0 %v638_v47 }
 0x11b   :  { %1030 = vmatprep.subr.mxu0 %v1078_v11 }
 0x11c   :  { %1031 = vmatpush3.msra.mxu0 %v637_v48 }
 0x11d   :  { %1032 = vmatprep.subr.mxu0 %v1078_v11 }
 0x11e   :  { %1033 = vmatpush3.msra.mxu0 %v636_v49 }
 0x11f   :  { %1034 = vmatprep.subr.mxu0 %v1078_v11 }
 0x120   :  { %1035 = vmatpush3.msra.mxu0 %v635_v50 }
 0x121   :  { %1036 = vmatprep.subr.mxu0 %v1078_v11 }
 0x122   :  { %1037 = vmatpush3.msra.mxu0 %v634_v51 }
 0x123   :  { %1038 = vmatprep.subr.mxu0 %v1078_v11 }
 0x124   :  { %1039 = vmatpush3.msra.mxu0 %v633_v52 }
 0x125   :  { %1040 = vmatprep.subr.mxu0 %v1078_v11 }
 0x126   :  { %1041 = vmatpush3.msra.mxu0 %v632_v53 }
 0x127   :  { %1042 = vmatprep.subr.mxu0 %v1078_v11 }
 0x128   :  { %1043 = vmatpush3.msra.mxu0 %v631_v54 }
 0x129   :  { %1044 = vmatprep.subr.mxu0 %v1078_v11 }
 0x12a   :  { %1045 = vmatpush3.msra.mxu0 %v630_v60 }
 0x12b   :  { %1046 = vmatprep.subr.mxu0 %v1078_v11 }
 0x12c   :  { %1047 = vmatpush3.msra.mxu0 %v629_v61 }
 0x12d   :  { %1048 = vmatprep.subr.mxu0 %v1078_v11 }
 0x12e   :  { %1049 = vmatpush3.msra.mxu0 %v628_v62 }
 0x1cf   :  { %v529_v56 = vpop.f32.mrf.mxu0 }
 0x1d0   :  { %v530_v57 = vadd.f32 %v737_v55, %v529_v56 }
 0x1d1   :  { %v982_v58 = vpop.f32.mrf.mxu0 }
 0x1d2   :  { %v533_v59 = vmax.f32 %v530_v57, 0.0 }
 0x1d4   :  { %1016 = vmatmul.mubr.f32.vlgmr.msra.gmra.mxu1 %v533_v59 }
 0x294   :  { %v623_v0 = vpop.f32.mrf.mxu1 }
 0x295   :  { %v624_v1 = vadd.f32 %v738_v63, %v623_v0 }
 0x296   :  { %v1017_v2 = vpop.f32.mrf.mxu1 }
 0x297   :  { %v627_v3 = vmax.f32 %v624_v1, 0.0 }
 0x299   :  { %1051 = vmatmul.mubr.f32.vlgmr.msra.gmra.mxu0 %v627_v3 }
 0x359   :  { %v717_v11 = vpop.f32.mrf.mxu0 }
 0x35a   :  { %v718_v5 = vadd.f32 %v739_v4, %v717_v11 }
 0x35b   :  { %v1052_v6 = vpop.f32.mrf.mxu0 }
 0x35c   :  { %721 = vst [vmem:[#allocation2] sm:$0xff] %v718_v5 }
 0x35d   :  { %1067 = shalt.err (!%p1064_p4)
}
 0x35e   :  { %731 = dma.vmem_to_hbm [thread:$0]  %s729_s19, 128, %s1728_s9, [#allocation3]  }
 0x35f   :  { %1076 = dma.done.wait [#allocation3], 128  }
 0x360   :  { %1077 = vsyncadd [#allocation3], 4294967168 }
 0x361   :  { %735 = vsyncpa [#allocation3], 1 }

</bundles_post_ra>
